<compile_context>
chip_gen: v7x
topology: tpu7x:2x2x1
jax: 0.10.0
libtpu: 0.0.40
codegen_flags: <defaults>
</compile_context>

<pallas_src>
import functools

import jax
import jax.numpy as jnp
from jax import lax
from jax.experimental import pallas as pl
from jax.experimental.pallas import tpu as pltpu

_INV_SQRT2 = 0.7071067811865476
_SQRT_2_OVER_PI = 0.7978845608028654


def _gelu(h, approximate):
    if approximate:
        # tanh approximation: transcendental goes to the EUP slot, not VALU.
        return 0.5 * h * (1.0 + jnp.tanh(_SQRT_2_OVER_PI * (h + 0.044715 * h * h * h)))
    # exact GELU (matches torch.nn.GELU() bit-for-bit in f32)
    return 0.5 * h * (1.0 + lax.erf(h * _INV_SQRT2))


# ----------------------------------------------------------------------------
# Kernels
# ----------------------------------------------------------------------------


def _mlp_resident_kernel(x_ref, w1_ref, b1_ref, w2_ref, b2_ref, o_ref, *,
                         h_chunk, num_chunks, approx_gelu):
    """Weights fully resident in VMEM; grid iterates over M tiles only.

    The hidden dim is processed in h_chunk-wide slices so the f32 GELU
    intermediate stays small; the (tile_m, D) f32 accumulator is a loop value
    and the output tile is written exactly once (no scratch RMW).
    """
    x = x_ref[...]

    if num_chunks == 1:
        h = jnp.dot(x, w1_ref[...], preferred_element_type=jnp.float32)
        h = _gelu(h + b1_ref[...], approx_gelu)
        acc = jnp.dot(h.astype(w2_ref.dtype), w2_ref[...],
                      preferred_element_type=jnp.float32)
    else:
        def body(c, acc):
            h0 = pl.multiple_of(c * h_chunk, h_chunk)
            h = jnp.dot(x, w1_ref[:, pl.ds(h0, h_chunk)],
                        preferred_element_type=jnp.float32)
            h = _gelu(h + b1_ref[:, pl.ds(h0, h_chunk)], approx_gelu)
            return acc + jnp.dot(h.astype(w2_ref.dtype),
                                 w2_ref[pl.ds(h0, h_chunk), :],
                                 preferred_element_type=jnp.float32)

        acc = lax.fori_loop(
            0, num_chunks, body,
            jnp.zeros((x.shape[0], o_ref.shape[-1]), jnp.float32),
            unroll=num_chunks <= 4)

    o_ref[...] = (acc + b2_ref[...]).astype(o_ref.dtype)


def _mlp_streaming_kernel(x_ref, w1_ref, b1_ref, w2_ref, b2_ref, o_ref,
                          acc_ref, *, approx_gelu):
    """H streamed over the innermost ("arbitrary") grid axis with an f32
    accumulator scratch (P3 pattern).  Used when weights exceed VMEM."""
    h_idx = pl.program_id(1)

    @pl.when(h_idx == 0)
    def _init():
        acc_ref[...] = jnp.zeros_like(acc_ref)

    h = jnp.dot(x_ref[...], w1_ref[...], preferred_element_type=jnp.float32)
    h = _gelu(h + b1_ref[...], approx_gelu)
    acc_ref[...] += jnp.dot(h.astype(w2_ref.dtype), w2_ref[...],
                            preferred_element_type=jnp.float32)

    @pl.when(h_idx == pl.num_programs(1) - 1)
    def _finalize():
        o_ref[...] = (acc_ref[...] + b2_ref[...]).astype(o_ref.dtype)


# ----------------------------------------------------------------------------
# Planning helpers
# ----------------------------------------------------------------------------


def _round_up(x, m):
    return ((x + m - 1) // m) * m


def _cdiv(a, b):
    return -(-a // b)


def _vmem_info(user_budget):
    """(physical VMEM bytes, residency budget bytes) for the local TPU."""
    try:
        cap = int(pltpu.get_tpu_info().vmem_capacity_bytes)
    except Exception:
        cap = 64 << 20  # assume the smallest generation (v7x) if unavailable
    budget = int(cap * 0.75) if user_budget is None else int(user_budget)
    return cap, min(budget, int(cap * 0.85))


def _vmem_limit(needed, cap):
    return min(max(int(needed * 1.3) + (4 << 20), 16 << 20), cap - (2 << 20))


def _pick_tile_m(M, target, pack):
    """Pack-aligned tile_m minimising zero padding for ~target-row tiles."""
    num_m = max(1, _cdiv(M, max(target, pack)))
    tm = _round_up(_cdiv(M, num_m), pack)
    return tm, num_m


def _pick_h_chunk(H, cap=512):
    """Largest 128-multiple divisor of H that is <= cap (or H itself)."""
    if H <= cap:
        return H
    for c in range(cap, 0, -128):
        if H % c == 0:
            return c
    return H


def _resident_bytes(D, H, tm, h_chunk, c_it, o_it, wbuf):
    return (wbuf * 2 * D * H * c_it            # W_fc + W_proj (resident)
            + wbuf * (H + D) * 4               # biases (f32)
            + 2 * tm * D * c_it                # x tile (double-buffered)
            + 2 * tm * D * o_it                # out tile (double-buffered)
            + 2 * tm * h_chunk * 4             # f32 hidden/GELU chunk temps
            + tm * D * 4)                      # f32 accumulator (vregs/VMEM)


def _streaming_bytes(D, tm, th, c_it, o_it):
    return (2 * 2 * D * th * c_it              # W_fc + W_proj slices (dbl-buf)
            + 2 * th * 4 + 2 * D * 4           # bias slices
            + 2 * tm * D * c_it
            + 2 * tm * D * o_it
            + tm * D * 4                       # f32 accumulator scratch
            + 2 * tm * th * 4)                 # f32 hidden/GELU temporaries


def _choose_tile_h(D, H, tm, c_it, o_it, budget):
    divs = [h for h in range(128, H + 1, 128) if H % h == 0] or [H]
    fits = [h for h in divs if _streaming_bytes(D, tm, h, c_it, o_it) <= budget]
    if not fits:
        return min(divs)
    best = max(fits)
    best256 = max([h for h in fits if h % 256 == 0], default=None)
    # v6e/v7x MXU is 2x256x256: prefer a 256-aligned slice unless it costs >2x.
    if best256 is not None and 2 * best256 >= best:
        return best256
    return best


# ----------------------------------------------------------------------------
# Public wrapper
# ----------------------------------------------------------------------------


def mlp_pallas(x, w_fc, b_fc, w_proj, b_proj, *, tile_m=256, tile_h=None,
               use_bf16=True, approx_gelu=True, vmem_budget_bytes=None,
               interpret=False):
    """nanoGPT MLP forward:  GELU(x @ W_fc + b_fc) @ W_proj + b_proj.

    x: (B, T, D); w_fc: (D, H); b_fc: (H,); w_proj: (H, D); b_proj: (D,)
    with H = 4*D (weights stored transposed w.r.t. torch.nn.Linear).
    approx_gelu=True uses the tanh GELU (EUP path; recommended on v6e/v7x);
    set False for exact-erf parity with torch.nn.GELU() (e.g. on v5e).
    """
    B, T, D = x.shape
    H = w_fc.shape[1]
    assert w_fc.shape == (D, H) and w_proj.shape == (H, D)
    assert b_fc.shape == (H,) and b_proj.shape == (D,)
    M = B * T

    out_dtype = x.dtype
    compute_dtype = jnp.bfloat16 if use_bf16 else x.dtype
    c_it = jnp.dtype(compute_dtype).itemsize
    o_it = jnp.dtype(out_dtype).itemsize
    pack = 16 if compute_dtype == jnp.bfloat16 else 8

    vmem_cap, budget = _vmem_info(vmem_budget_bytes)

    # ------------------ M tiling (pack-aligned, minimal padding) ------------
    tm, num_m = _pick_tile_m(M, min(tile_m, _round_up(M, pack)), pack)

    # ------------------ resident vs. streaming decision ---------------------
    h_chunk = _pick_h_chunk(H)
    fp_res1 = _resident_bytes(D, H, tm, h_chunk, c_it, o_it, wbuf=1)
    fp_res2 = _resident_bytes(D, H, tm, h_chunk, c_it, o_it, wbuf=2)
    if tile_h is not None:
        want_resident = tile_h >= H
    else:
        want_resident = fp_res1 <= budget

    if want_resident and num_m == 1 and M >= 4 * pack:
        # Ensure >=2 "parallel" M tiles so both v7x TensorCores are fed.
        num_m = 2
        tm = _round_up(_cdiv(M, num_m), pack)
        fp_res1 = _resident_bytes(D, H, tm, h_chunk, c_it, o_it, wbuf=1)
        fp_res2 = _resident_bytes(D, H, tm, h_chunk, c_it, o_it, wbuf=2)

    if not want_resident:
        th = tile_h if tile_h is not None else _choose_tile_h(
            D, H, tm, c_it, o_it, budget)
        # Larger m-tiles halve the num_m-fold weight re-streaming if VMEM allows.
        if tile_h is None and tm < 512 and M > tm:
            tm_big, num_m_big = _pick_tile_m(M, 512, pack)
            th_big = _choose_tile_h(D, H, tm_big, c_it, o_it, budget)
            if (num_m_big < num_m
                    and _streaming_bytes(D, tm_big, th_big, c_it, o_it) <= budget):
                tm, num_m, th = tm_big, num_m_big, th_big
        assert H % th == 0
        num_h = H // th
    else:
        th, num_h = H, 1

    m_pad = tm * num_m

    # ------------------ operands -------------------------------------------
    x2 = x.reshape(M, D).astype(compute_dtype)
    if m_pad != M:
        x2 = jnp.pad(x2, ((0, m_pad - M), (0, 0)))
    w1 = w_fc.astype(compute_dtype)
    w2 = w_proj.astype(compute_dtype)
    b1 = b_fc.reshape(1, H).astype(jnp.float32)
    b2 = b_proj.reshape(1, D).astype(jnp.float32)

    weight_stream = 1 if want_resident else num_m
    cost = pl.CostEstimate(
        flops=4 * m_pad * D * H,                      # two matmuls, 2*M*D*H each
        transcendentals=m_pad * H,                    # GELU (tanh or erf)
        bytes_accessed=(m_pad * D * c_it
                        + weight_stream * 2 * D * H * c_it
                        + (H + D) * 4
                        + m_pad * D * o_it),
    )

    # ------------------ pallas_call builders ---------------------------------
    def run_resident(const_mode, vmem_needed):
        def const_spec(shape):
            if const_mode is None:
                return pl.BlockSpec(shape, lambda i: (0, 0))
            return pl.BlockSpec(shape, lambda i: (0, 0), pipeline_mode=const_mode)

        kernel = functools.partial(
            _mlp_resident_kernel, h_chunk=h_chunk,
            num_chunks=H // h_chunk, approx_gelu=approx_gelu)
        return pl.pallas_call(
            kernel,
            out_shape=jax.ShapeDtypeStruct((m_pad, D), out_dtype),
            grid_spec=pltpu.PrefetchScalarGridSpec(
                num_scalar_prefetch=0,
                grid=(num_m,),
                in_specs=[
                    pl.BlockSpec((tm, D), lambda i: (i, 0)),   # x tile
                    const_spec((D, H)),                        # W_fc (resident)
                    const_spec((1, H)),                        # b_fc
                    const_spec((H, D)),                        # W_proj
                    const_spec((1, D)),                        # b_proj
                ],
                out_specs=pl.BlockSpec((tm, D), lambda i: (i, 0)),
            ),
            compiler_params=pltpu.CompilerParams(
                dimension_semantics=("parallel",),
                vmem_limit_bytes=_vmem_limit(vmem_needed, vmem_cap),
            ),
            cost_estimate=cost,
            interpret=interpret,
        )(x2, w1, b1, w2, b2)

    def run_streaming(bias_mode):
        def bias_spec():
            if bias_mode is None:
                return pl.BlockSpec((1, D), lambda i, h: (0, 0))
            return pl.BlockSpec((1, D), lambda i, h: (0, 0),
                                pipeline_mode=bias_mode)

        kernel = functools.partial(_mlp_streaming_kernel,
                                   approx_gelu=approx_gelu)
        vmem_needed = _streaming_bytes(D, tm, th, c_it, o_it)
        return pl.pallas_call(
            kernel,
            out_shape=jax.ShapeDtypeStruct((m_pad, D), out_dtype),
            grid_spec=pltpu.PrefetchScalarGridSpec(
                num_scalar_prefetch=0,
                grid=(num_m, num_h),
                in_specs=[
                    pl.BlockSpec((tm, D), lambda i, h: (i, 0)),   # x tile
                    pl.BlockSpec((D, th), lambda i, h: (0, h)),   # W_fc slice
                    pl.BlockSpec((1, th), lambda i, h: (0, h)),   # b_fc slice
                    pl.BlockSpec((th, D), lambda i, h: (h, 0)),   # W_proj slice
                    bias_spec(),                                  # b_proj
                ],
                out_specs=pl.BlockSpec((tm, D), lambda i, h: (i, 0)),
                scratch_shapes=[pltpu.VMEM((tm, D), jnp.float32)],
            ),
            compiler_params=pltpu.CompilerParams(
                dimension_semantics=("parallel", "arbitrary"),
                vmem_limit_bytes=_vmem_limit(vmem_needed, vmem_cap),
            ),
            cost_estimate=cost,
            interpret=interpret,
        )(x2, w1, b1, w2, b2)

    # If single-buffering (pl.Buffered(1)) of constant blocks is rejected by
    # this jax build, fall back to default double-buffering; any unrelated
    # error re-surfaces from the fallback call, so nothing is silently masked.
    _FALLBACK_ERRS = (pltpu.LoweringException, ValueError, NotImplementedError,
                      TypeError)

    out = None
    if want_resident:
        if fp_res1 <= budget or tile_h is not None:
            try:
                out = run_resident(pl.Buffered(1), fp_res1)
            except _FALLBACK_ERRS:
                out = None
        if out is None and (fp_res2 <= budget or tile_h is not None):
            out = run_resident(None, fp_res2)

    if out is None:
        if want_resident:
            # Residency only fit single-buffered and Buffered(1) was rejected:
            # re-plan with the hidden dim streamed over the grid instead.
            th = _choose_tile_h(D, H, tm, c_it, o_it, budget)
            assert H % th == 0
            num_h = H // th
        try:
            out = run_streaming(pl.Buffered(1))
        except _FALLBACK_ERRS:
            out = run_streaming(None)

    return out[:M].reshape(B, T, D)


def mlp_reference(x, w_fc, b_fc, w_proj, b_proj):
    h = x @ w_fc + b_fc
    h = 0.5 * h * (1.0 + lax.erf(h * _INV_SQRT2))   # exact GELU (torch default)
    return h @ w_proj + b_proj


if __name__ == "__main__":
    # nanoGPT-style toy config: n_embd = 32 -> hidden = 4 * 32 = 128.
    B, T, D = 2, 8, 32
    H = 4 * D

    key = jax.random.PRNGKey(0)
    kx, k1, k2, k3, k4 = jax.random.split(key, 5)

    x = jax.random.normal(kx, (B, T, D), dtype=jnp.float32)
    # torch.nn.Linear stores (out, in); we pass the transposed (in, out) layout.
    w_fc = jax.random.normal(k1, (D, H), dtype=jnp.float32) / jnp.sqrt(D)
    b_fc = jax.random.normal(k2, (H,), dtype=jnp.float32) * 0.01
    w_proj = jax.random.normal(k3, (H, D), dtype=jnp.float32) / jnp.sqrt(H)
    b_proj = jax.random.normal(k4, (D,), dtype=jnp.float32) * 0.01

    y = jax.block_until_ready(mlp_pallas(x, w_fc, b_fc, w_proj, b_proj))
    y_ref = mlp_reference(x, w_fc, b_fc, w_proj, b_proj)

    # bf16 MXU inputs + tanh-GELU vs. the f32 exact-erf reference.
    max_err = float(jnp.max(jnp.abs(y - y_ref)))
    assert jnp.allclose(y, y_ref, atol=5e-2, rtol=5e-2), (
        f"mismatch vs reference: max abs err {max_err:.3e}")
    print("KERNEL_OK")
</pallas_src>

<mosaic_0001>
module attributes {stable_mosaic.version = 11 : i64} {
  func.func @_mlp_resident_kernel(%arg0: i32, %arg1: memref<16x32xbf16, #tpu.memory_space<vmem>>, %arg2: memref<32x128xbf16, #tpu.memory_space<vmem>>, %arg3: memref<1x128xf32, #tpu.memory_space<vmem>>, %arg4: memref<128x32xbf16, #tpu.memory_space<vmem>>, %arg5: memref<1x32xf32, #tpu.memory_space<vmem>>, %arg6: memref<16x32xf32, #tpu.memory_space<vmem>>) attributes {dimension_semantics = [#tpu.dimension_semantics<parallel>], iteration_bounds = array<i64: 1>, scalar_prefetch = 0 : i64, scratch_operands = 0 : i64, tpu.core_type = #tpu.core_type<tc>, window_params = [{transform_indices = @transform_0, window_bounds = array<i64: 16, 32>}, {pipeline_mode = #tpu.pipeline_mode<synchronous>, transform_indices = @transform_1, window_bounds = array<i64: 32, 128>}, {pipeline_mode = #tpu.pipeline_mode<synchronous>, transform_indices = @transform_2, window_bounds = array<i64: 1, 128>}, {pipeline_mode = #tpu.pipeline_mode<synchronous>, transform_indices = @transform_3, window_bounds = array<i64: 128, 32>}, {pipeline_mode = #tpu.pipeline_mode<synchronous>, transform_indices = @transform_4, window_bounds = array<i64: 1, 32>}, {transform_indices = @transform_5, window_bounds = array<i64: 16, 32>}]} {
    %c0 = arith.constant 0 : index
    %c0_0 = arith.constant 0 : index
    %0 = vector.load %arg1[%c0, %c0_0] : memref<16x32xbf16, #tpu.memory_space<vmem>>, vector<16x32xbf16>
    %c0_1 = arith.constant 0 : index
    %c0_2 = arith.constant 0 : index
    %1 = vector.load %arg2[%c0_1, %c0_2] : memref<32x128xbf16, #tpu.memory_space<vmem>>, vector<32x128xbf16>
    %cst = arith.constant dense<0.000000e+00> : vector<16x128xf32>
    %2 = tpu.matmul %0, %1, %cst {dimension_numbers = #tpu.dot_dimension_numbers<[1], [0], [0], [1], [0, 0, 1, 1], [], []>} : vector<16x32xbf16>, vector<32x128xbf16>, vector<16x128xf32> -> vector<16x128xf32>
    %c0_3 = arith.constant 0 : index
    %c0_4 = arith.constant 0 : index
    %3 = vector.load %arg3[%c0_3, %c0_4] : memref<1x128xf32, #tpu.memory_space<vmem>>, vector<1x128xf32>
    %4 = vector.broadcast %3 : vector<1x128xf32> to vector<16x128xf32>
    %5 = arith.addf %2, %4 : vector<16x128xf32>
    %cst_5 = arith.constant 5.000000e-01 : f32
    %6 = vector.broadcast %cst_5 : f32 to vector<16x128xf32>
    %7 = arith.mulf %6, %5 : vector<16x128xf32>
    %cst_6 = arith.constant 4.471500e-02 : f32
    %8 = vector.broadcast %cst_6 : f32 to vector<16x128xf32>
    %9 = arith.mulf %8, %5 : vector<16x128xf32>
    %10 = arith.mulf %9, %5 : vector<16x128xf32>
    %11 = arith.mulf %10, %5 : vector<16x128xf32>
    %12 = arith.addf %5, %11 : vector<16x128xf32>
    %cst_7 = arith.constant 0.797884583 : f32
    %13 = vector.broadcast %cst_7 : f32 to vector<16x128xf32>
    %14 = arith.mulf %13, %12 : vector<16x128xf32>
    %15 = math.tanh %14 : vector<16x128xf32>
    %cst_8 = arith.constant 1.000000e+00 : f32
    %16 = vector.broadcast %cst_8 : f32 to vector<16x128xf32>
    %17 = arith.addf %16, %15 : vector<16x128xf32>
    %18 = arith.mulf %7, %17 : vector<16x128xf32>
    %19 = arith.truncf %18 : vector<16x128xf32> to vector<16x128xbf16>
    %c0_9 = arith.constant 0 : index
    %c0_10 = arith.constant 0 : index
    %20 = vector.load %arg4[%c0_9, %c0_10] : memref<128x32xbf16, #tpu.memory_space<vmem>>, vector<128x32xbf16>
    %cst_11 = arith.constant dense<0.000000e+00> : vector<16x32xf32>
    %21 = tpu.matmul %19, %20, %cst_11 {dimension_numbers = #tpu.dot_dimension_numbers<[1], [0], [0], [1], [0, 0, 1, 1], [], []>} : vector<16x128xbf16>, vector<128x32xbf16>, vector<16x32xf32> -> vector<16x32xf32>
    %c0_12 = arith.constant 0 : index
    %c0_13 = arith.constant 0 : index
    %22 = vector.load %arg5[%c0_12, %c0_13] : memref<1x32xf32, #tpu.memory_space<vmem>>, vector<1x32xf32>
    %23 = vector.broadcast %22 : vector<1x32xf32> to vector<16x32xf32>
    %24 = arith.addf %21, %23 : vector<16x32xf32>
    %c0_14 = arith.constant 0 : index
    %c0_15 = arith.constant 0 : index
    %25 = vector.load %arg6[%c0_14, %c0_15] : memref<16x32xf32, #tpu.memory_space<vmem>>, vector<16x32xf32>
    tpu.vector_store %arg6[%c0_14, %c0_15], %24 {strides = array<i32>} : memref<16x32xf32, #tpu.memory_space<vmem>>, vector<16x32xf32>,
    return
  }
  func.func @transform_0(%arg0: i32) -> (i32, i32) {
    %c0_i32 = arith.constant 0 : i32
    %c0_i32_0 = arith.constant 0 : i32
    return %arg0, %c0_i32 : i32, i32
  }
  func.func @transform_1(%arg0: i32) -> (i32, i32) {
    %c0_i32 = arith.constant 0 : i32
    %c0_i32_0 = arith.constant 0 : i32
    %c0_i32_1 = arith.constant 0 : i32
    return %c0_i32, %c0_i32_0 : i32, i32
  }
  func.func @transform_2(%arg0: i32) -> (i32, i32) {
    %c0_i32 = arith.constant 0 : i32
    %c0_i32_0 = arith.constant 0 : i32
    %c0_i32_1 = arith.constant 0 : i32
    return %c0_i32, %c0_i32_0 : i32, i32
  }
  func.func @transform_3(%arg0: i32) -> (i32, i32) {
    %c0_i32 = arith.constant 0 : i32
    %c0_i32_0 = arith.constant 0 : i32
    %c0_i32_1 = arith.constant 0 : i32
    return %c0_i32, %c0_i32_0 : i32, i32
  }
  func.func @transform_4(%arg0: i32) -> (i32, i32) {
    %c0_i32 = arith.constant 0 : i32
    %c0_i32_0 = arith.constant 0 : i32
    %c0_i32_1 = arith.constant 0 : i32
    return %c0_i32, %c0_i32_0 : i32, i32
  }
  func.func @transform_5(%arg0: i32) -> (i32, i32) {
    %c0_i32 = arith.constant 0 : i32
    %c0_i32_0 = arith.constant 0 : i32
    return %arg0, %c0_i32 : i32, i32
  }
}

</mosaic_0001>

<bundles_post_ra>
// kernel: tpu_custom_call.1
= control target key start
LH: loop header
LB: loop body
LE: loop exit
PB: predicated region body
PF: predicated region fallthrough
CT: control target
= control target key end

     0   :  { %v344_v1 = vmov 0.0   ;;  %vm345_vm0 = vmmov 0   ;;  %vm52_vm1 = vcmask 261120   ;;  %s433_s0 = inlined_call_operand.vmem [shape: bf16[16,32], index: 0, kind: input, shape index: {}]   ;;  %s434_s1 = inlined_call_operand.vmem [shape: bf16[32,128], index: 1, kind: input, shape index: {}]   ;;  %s435_s2 = inlined_call_operand.vmem [shape: f32[1,128], index: 2, kind: input, shape index: {}]   ;;  %s436_s3 = inlined_call_operand.vmem [shape: bf16[128,32], index: 3, kind: input, shape index: {}]   ;;  %s437_s4 = inlined_call_operand.vmem [shape: f32[1,32], index: 4, kind: input, shape index: {}]   ;;  %s438_s5 = inlined_call_operand.hbm [shape: f32[16,32], index: 5, kind: output, shape index: {}]  }
   0x1   :  { %v305_v0 = vld [vmem:[%s434_s1] sm:$0xff]   ;;  %272 = vmatprep.subr.bf16.mxu0 %v344_v1  ;;  %280 = vmatprep.subr.bf16.mxu1 %v344_v1  ;;  %v306_v2 = vld [vmem:[%s434_s1 + $0x8] sm:$0xff]  }
   0x2   :  { %273 = vmatpush3.bf16.msra.mxu0 %v305_v0  ;;  %276 = vmatprep.mubr.msk.bf16.mxu0 %vm345_vm0, %v344_v1  ;;  %v307_v3 = vld [vmem:[%s433_s0] sm:$0xff]  }
   0x3   :  { %274 = vmatprep.subr.bf16.mxu0 %v344_v1  ;;  %296 = vmatprep.mubr.msk.bf16.mxu1 %vm345_vm0, %v344_v1 }
   0x6   :  { %275 = vmatpush3.bf16.msra.mxu0 %v306_v2 }
   0x7   :  { %10 = vsyncpa [#allocation3], 0  ;;  %v308_v4 = vld [vmem:[%s436_s3] sm:$0xff]   ;;  %v309_v5 = vld [vmem:[%s436_s3 + $0x8] sm:$0xff]   ;;  %s346_s15 = smov [#allocation2]  }
   0x8   :  { %281 = vmatpush3.bf16.msra.mxu1 %v308_v4  ;;  %v310_v6 = vld [vmem:[%s436_s3 + $0x10] sm:$0xff]   ;;  %v311_v7 = vld [vmem:[%s436_s3 + $0x18] sm:$0xff]   ;;  %v312_v8 = vld [vmem:[%s436_s3 + $0x20] sm:$0xff]   ;;  %s235_s16 = sshll.u32 %s346_s15, 4  ;;  %s236_s16 = int_to_ptr.vmem [resolvable:$true] %s235_s16 }
   0x9   :  { %277 = vmatmul.mubr.msk.bf16.vlgmr.msra.gmra.mrb[0].mxu0 %vm52_vm1, %v307_v3  ;;  %282 = vmatprep.subr.bf16.mxu1 %v344_v1  ;;  %v313_v9 = vld [vmem:[%s436_s3 + $0x28] sm:$0xff]   ;;  %v314_v10 = vld [vmem:[%s436_s3 + $0x30] sm:$0xff]   ;;  %v315_v11 = vld [vmem:[%s436_s3 + $0x38] sm:$0xff]   ;;  %s320_s17 = scalar_lea.vmem %s236_s16, 256  ;;  %p325_p1 = scmp.lt.s32.totalorder %s236_s16, %s236_s16 }
   0xa   :  { %v246_v12 = vld [vmem:[%s435_s2] ss:$0 sm:$0xff]  ;;  %p321_p0 = scmp.ne.s32.totalorder %s236_s16, %s320_s17  ;;  %p326_p2 = scmp.lt.s32.totalorder %s320_s17, %s320_s17 }
   0xb   :  { %v251_v38 = vld [vmem:[%s437_s4] ss:$0 sm:$0xff] }
   0xc   :  { %283 = vmatpush3.bf16.msra.mxu1 %v309_v5  ;;  %p327_p3 = por %p326_p2, %p325_p1 }
   0xd   :  { %284 = vmatprep.subr.bf16.mxu1 %v344_v1 }
   0xe   :  { %p328_p4 = pnand %p327_p3, %p321_p0 }
  0x10   :  { %285 = vmatpush3.bf16.msra.mxu1 %v310_v6 }
  0x11   :  { %286 = vmatprep.subr.bf16.mxu1 %v344_v1 }
  0x14   :  { %287 = vmatpush3.bf16.msra.mxu1 %v311_v7 }
  0x15   :  { %288 = vmatprep.subr.bf16.mxu1 %v344_v1 }
  0x18   :  { %289 = vmatpush3.bf16.msra.mxu1 %v312_v8 }
  0x19   :  { %290 = vmatprep.subr.bf16.mxu1 %v344_v1 }
  0x1c   :  { %291 = vmatpush3.bf16.msra.mxu1 %v313_v9 }
  0x1d   :  { %292 = vmatprep.subr.bf16.mxu1 %v344_v1 }
  0x20   :  { %293 = vmatpush3.bf16.msra.mxu1 %v314_v10 }
  0x21   :  { %294 = vmatprep.subr.bf16.mxu1 %v344_v1 }
  0x24   :  { %295 = vmatpush3.bf16.msra.mxu1 %v315_v11 }
  0xdc   :  { %v90_v13 = vpop.f32.mrb[0].mxu0 }
  0xdd   :  { %v91_v14 = vadd.f32 %v246_v12, %v90_v13  ;;  %v278_v15 = vpop.f32.mrb[1].mxu0 }
  0xde   :  { %v93_v16 = vpop.f32.mrb[2].mxu0 }
  0xdf   :  { %v99_v17 = vmul.f32 0.044715, %v91_v14  ;;  %v94_v18 = vadd.f32 %v246_v12, %v93_v16  ;;  %v279_v19 = vpop.f32.mrb[3].mxu0  ;;  %v97_v32 = vmul.f32 0.5, %v91_v14 }
  0xe1   :  { %v101_v20 = vmul.f32 %v99_v17, %v91_v14  ;;  %v100_v21 = vmul.f32 0.044715, %v94_v18  ;;  %v98_v33 = vmul.f32 0.5, %v94_v18 }
  0xe3   :  { %v103_v22 = vmul.f32 %v101_v20, %v91_v14  ;;  %v102_v23 = vmul.f32 %v100_v21, %v94_v18 }
  0xe5   :  { %v104_v24 = vmul.f32 %v102_v23, %v94_v18  ;;  %v105_v25 = vadd.f32 %v103_v22, %v91_v14 }
  0xe7   :  { %v106_v26 = vadd.f32 %v104_v24, %v94_v18  ;;  %v107_v27 = vmul.f32 0.7978846, %v105_v25 }
  0xe9   :  { %v108_v28 = vmul.f32 0.7978846, %v106_v26  ;;  %316 = vtanh.f32 %v107_v27 }
  0xeb   :  { %318 = vtanh.f32 %v108_v28 }
  0xf3   :  { %v317_v29 = vpop.eup %316 }
  0xf4   :  { %v111_v30 = vadd.f32 1.0, %v317_v29 }
  0xf5   :  { %v319_v31 = vpop.eup %318 }
  0xf6   :  { %v112_v34 = vadd.f32 1.0, %v319_v31  ;;  %v113_v35 = vmul.f32 %v111_v30, %v97_v32 }
  0xf8   :  { %v114_v36 = vmul.f32 %v112_v34, %v98_v33 }
  0xfa   :  { %v115_v37 = vpack.c.bf16 %v114_v36, %v113_v35 }
  0xfc   :  { %297 = vmatmul.mubr.bf16.vlgmr.msra.gmra.mrb[0].mxu1 %v115_v37 }
 0x1cf   :  { %v221_v39 = vpop.f32.mrb[0].mxu1 }
 0x1d0   :  { %v222_v40 = vadd.f32 %v251_v38, %v221_v39  ;;  %v298_v41 = vpop.f32.mrb[1].mxu1 }
 0x1d1   :  { %v224_v42 = vpop.f32.mrb[2].mxu1 }
 0x1d2   :  { %228 = vst.msk [vmem:[#allocation2] sm:$0xff] %vm52_vm1, %v222_v40  ;;  %v225_v43 = vadd.f32 %v251_v38, %v224_v42  ;;  %v299_v44 = vpop.f32.mrb[3].mxu1 }
 0x1d4   :  { %229 = vst.msk [vmem:[#allocation2 + $0x8] sm:$0xff] %vm52_vm1, %v225_v43 }
 0x1d5   :  { %331 = shalt.err (!%p328_p4)
}
 0x1d6   :  { %s332_s19 = scalar_lea.hbm %s438_s5, 256 }
 0x1d7   :  { %p333_p5 = scmp.ne.s32.totalorder %s438_s5, %s332_s19  ;;  %p336_p6 = scmp.lt.u32.totalorder %s332_s19, %s438_s5 }
 0x1d9   :  { %p338_p7 = pnand %p336_p6, %p333_p5 }
 0x1db   :  { %341 = shalt.err (!%p338_p7)
}
 0x1dc   :  { %s347_s24 = smov 128   ;;  %s348_s25 = smov 8  }
 0x1dd   :  { %241 = dma.vmem_to_hbm [thread:$0]  %s236_s16, 256, %s438_s5, [#allocation3], %s347_s24, %s347_s24, %s348_s25  }
 0x1de   :  { %342 = dma.done.wait [#allocation3], 256  }
 0x1df   :  { %343 = vsyncadd [#allocation3], 4294967040 }
 0x1e0   :  { %245 = vsyncpa [#allocation3], 1 }

</bundles_post_ra>
